<compile_context>
chip_gen: v6e
topology: v6e:2x2x1
jax: 0.10.0
libtpu: 0.0.40
codegen_flags: <defaults>
</compile_context>

<pallas_src>
import functools

import jax
import jax.numpy as jnp
from jax import lax
from jax.experimental import pallas as pl
from jax.experimental.pallas import tpu as pltpu

_EPS = 1e-12  # matches torch.nn.functional.normalize default eps


def _cosine_sim_kernel(lhs_ref, rhs_ref, linv_ref, rinv_ref, out_ref, *, exp):
    # lhs_ref: (tN, d)   rhs_ref: (tN_, d)
    # linv_ref: (tN, 1)  rinv_ref: (1, tN_)   out_ref: (tN, tN_)
    #
    # Raw operands (bf16 stays bf16, f32 stays f32) go directly into the MXU
    # with f32 accumulation; contraction is on the feature axis of both
    # operands, so no (tN_, d) -> (d, tN_) transpose is materialized.
    sim = lax.dot_general(
        lhs_ref[...], rhs_ref[...],
        dimension_numbers=(((1,), (1,)), ((), ())),
        preferred_element_type=jnp.float32,
    )

    # Cosine normalization as an f32 output scaling (precomputed inverse
    # norms) -- no per-step square / lane-reduce / rsqrt / recast work.
    sim = sim * linv_ref[...] * rinv_ref[...]

    if exp != 1:
        if exp == 2:
            sim = sim * sim
        elif isinstance(exp, int):
            sim = lax.integer_pow(sim, exp)  # VALU multiplies, no EUP exp/log
        else:
            # TODO(synk): float exponent lowers to exp(log(x)) on the EUP and
            # NaNs for negative cosines; the torch module has the same hazard.
            sim = sim ** exp

    out_ref[...] = sim.astype(out_ref.dtype)


def _inv_norms(x, num_heads, d):
    """Per-head inverse L2 norms, shape (B, H, N), f32.  Tiny XLA prepass."""
    B, N, _ = x.shape
    x32 = x.astype(jnp.float32).reshape(B, N, num_heads, d)
    ssq = jnp.sum(x32 * x32, axis=-1)                       # (B, N, H)
    # x / max(||x||, eps) == x * rsqrt(max(sum(x^2), eps^2))
    inv = lax.rsqrt(jnp.maximum(ssq, _EPS * _EPS))
    return inv.transpose(0, 2, 1)                            # (B, H, N)


def _pick_sublane_tile(n, preferred):
    """Second-to-last block dim: bounded bulk tile (multiple of 8) or full n."""
    if n <= preferred:
        return n
    assert preferred % 8 == 0
    return preferred


def _pick_lane_tile(n, preferred):
    """Last block dim: bounded bulk tile (multiple of 128) or full n."""
    if n <= preferred:
        return n
    assert preferred % 128 == 0
    return preferred


def headwise_cosine_similarity(lhs, rhs, num_heads, exp=1, *,
                               out_dtype=None, tn=512, tn_=512):
    """Pallas equivalent of HeadwiseCosineSimilarity.forward.

    lhs: (B, N, dim), rhs: (B, N_, dim).  Returns ((B, H, N, N_), None).

    out_dtype: optional narrower output dtype (e.g. jnp.bfloat16) -- the op is
      output-write-bound, so halving the (B,H,N,N_) writeback is the single
      largest lever when the consumer tolerates bf16.
    tn / tn_: bulk tile sizes (defaults keep the double-buffered footprint a
      few MiB, safe on v5e's 16 MiB default scoped VMEM and v7x's 64 MiB
      physical VMEM; on v6e/v5e they can be raised to 1024 if N/N_ are large).
    """
    B, N, dim = lhs.shape
    B2, N_, dim2 = rhs.shape
    assert B == B2 and dim == dim2
    H = num_heads
    assert dim % H == 0
    d = dim // H
    out_dtype = lhs.dtype if out_dtype is None else out_dtype

    # Hardened tile picker: bounded bulk tiles + pl.cdiv grid with masked edge
    # tiles (never a full-extent fallback that can exceed the VMEM budget).
    tN = _pick_sublane_tile(N, tn)
    tN_ = _pick_lane_tile(N_, tn_)
    grid = (B, H, pl.cdiv(N, tN), pl.cdiv(N_, tN_))  # j (N_ tiles) innermost
    # TODO(synk): if production N_ < 128, emit the transposed (N_, N) map per
    # head instead so output stores stay lane-dense.

    # Tiny f32 side inputs with the per-row inverse norms; removes all
    # per-step normalization compute/recompute from the kernel.
    l_inv = _inv_norms(lhs, H, d).reshape(B, H, N, 1)
    r_inv = _inv_norms(rhs, H, d).reshape(B, H, 1, N_)

    if d % 128 == 0:
        # Fast path: no host-side head transpose.  The head is selected as a
        # block index along the feature (lane) axis of the original array.
        lhs_in, rhs_in = lhs, rhs
        lhs_spec = pl.BlockSpec((None, tN, d), lambda b, h, i, j: (b, i, h))
        rhs_spec = pl.BlockSpec((None, tN_, d), lambda b, h, i, j: (b, j, h))
    else:
        # d_head not lane-aligned: split heads head-major on the host.
        # TODO(synk): avoid/fuse this transpose (accept head-major inputs or
        # pad d_head to 128) -- it is an extra HBM read+write of both inputs.
        lhs_in = lhs.reshape(B, N, H, d).transpose(0, 2, 1, 3)
        rhs_in = rhs.reshape(B, N_, H, d).transpose(0, 2, 1, 3)
        # lhs index_map is invariant in j -> lhs tile stays resident across
        # the inner N_ loop (no re-DMA).
        lhs_spec = pl.BlockSpec((None, None, tN, d), lambda b, h, i, j: (b, h, i, 0))
        rhs_spec = pl.BlockSpec((None, None, tN_, d), lambda b, h, i, j: (b, h, j, 0))

    linv_spec = pl.BlockSpec((None, None, tN, 1), lambda b, h, i, j: (b, h, i, 0))
    rinv_spec = pl.BlockSpec((None, None, 1, tN_), lambda b, h, i, j: (b, h, 0, j))
    out_spec = pl.BlockSpec((None, None, tN, tN_), lambda b, h, i, j: (b, h, i, j))

    kernel = functools.partial(_cosine_sim_kernel, exp=exp)

    # Explicit VMEM budget: double-buffered per-step footprint plus headroom,
    # so tile choices remain safe on v7x (64 MiB physical) and v5e (16 MiB
    # default scoped limit) without relying on defaults.
    out_item = jnp.dtype(out_dtype).itemsize
    per_step = (tN * d * lhs.dtype.itemsize
                + tN_ * d * rhs.dtype.itemsize
                + (tN + tN_) * 4
                + tN * tN_ * out_item)
    vmem_limit = int(min(max(32 << 20, 2 * per_step + (4 << 20)), 64 << 20))

    # Advisory cost for XLA's scheduler around the custom call.
    flops = 2 * B * H * N * N_ * d
    bytes_accessed = (lhs.size * lhs.dtype.itemsize
                      + rhs.size * rhs.dtype.itemsize
                      + l_inv.size * 4 + r_inv.size * 4
                      + B * H * N * N_ * out_item)
    cost = pl.CostEstimate(flops=flops, transcendentals=0,
                           bytes_accessed=bytes_accessed)

    sim = pl.pallas_call(
        kernel,
        out_shape=jax.ShapeDtypeStruct((B, H, N, N_), out_dtype),
        grid=grid,
        in_specs=[lhs_spec, rhs_spec, linv_spec, rinv_spec],
        out_specs=out_spec,
        compiler_params=pltpu.CompilerParams(
            # Innermost j is "arbitrary": keeps the lhs tile resident across
            # the inner loop and unsplit across v7x's two TensorCores; B/H/i
            # stay "parallel" for megacore sharding.
            dimension_semantics=("parallel", "parallel", "parallel", "arbitrary"),
            vmem_limit_bytes=vmem_limit,
        ),
        cost_estimate=cost,
    )(lhs_in, rhs_in, l_inv, r_inv)

    return sim, None


def _reference(lhs, rhs, num_heads, exp=1):
    """Pure-JAX reference mirroring the PyTorch module line by line."""
    B, N, dim = lhs.shape
    N_ = rhs.shape[1]
    H = num_heads
    l = lhs.astype(jnp.float32).reshape(B, N, H, -1).transpose(0, 2, 1, 3)
    r = rhs.astype(jnp.float32).reshape(B, N_, H, -1).transpose(0, 2, 1, 3)
    l = l.reshape(B * H, N, -1)
    r = r.reshape(B * H, N_, -1)
    l = l / jnp.maximum(jnp.linalg.norm(l, axis=-1, keepdims=True), _EPS)
    r = r / jnp.maximum(jnp.linalg.norm(r, axis=-1, keepdims=True), _EPS)
    sim = l @ jnp.swapaxes(r, -1, -2)
    sim = sim ** exp
    return sim.reshape(B, H, N, N_)


if __name__ == "__main__":
    key = jax.random.PRNGKey(0)
    k1, k2, k3, k4, k5, k6 = jax.random.split(key, 6)

    # Case 1: small d_head (head-major path), f32, exp=1.
    B, N, N_, H, dim = 2, 8, 8, 4, 32  # d_head = 8
    lhs = jax.random.normal(k1, (B, N, dim), dtype=jnp.float32)
    rhs = jax.random.normal(k2, (B, N_, dim), dtype=jnp.float32)
    sim, aux = headwise_cosine_similarity(lhs, rhs, num_heads=H, exp=1)
    sim = jax.block_until_ready(sim)
    assert aux is None and sim.shape == (B, H, N, N_)
    ref = _reference(lhs, rhs, num_heads=H, exp=1)
    assert jnp.allclose(sim, ref, atol=1e-5, rtol=1e-5), "mismatch (f32, exp=1)"

    # Case 2: same inputs, integer exponent path (exp=3).
    sim3, _ = headwise_cosine_similarity(lhs, rhs, num_heads=H, exp=3)
    sim3 = jax.block_until_ready(sim3)
    ref3 = _reference(lhs, rhs, num_heads=H, exp=3)
    assert jnp.allclose(sim3, ref3, atol=1e-5, rtol=1e-5), "mismatch (f32, exp=3)"

    # Case 3: optional narrow output dtype (bf16 writeback) for f32 inputs.
    simb, _ = headwise_cosine_similarity(lhs, rhs, num_heads=H, exp=1,
                                         out_dtype=jnp.bfloat16)
    simb = jax.block_until_ready(simb)
    assert simb.dtype == jnp.bfloat16
    assert jnp.allclose(simb.astype(jnp.float32), ref, atol=2e-2), \
        "mismatch (f32 in, bf16 out)"

    # Case 4: d_head = 128 (no-transpose fast path), bf16 inputs.
    Bb, Nb, Nb_, Hb, dimb = 2, 8, 16, 2, 256  # d_head = 128
    lhs_b = jax.random.normal(k3, (Bb, Nb, dimb), dtype=jnp.bfloat16)
    rhs_b = jax.random.normal(k4, (Bb, Nb_, dimb), dtype=jnp.bfloat16)
    sim_b, _ = headwise_cosine_similarity(lhs_b, rhs_b, num_heads=Hb, exp=1)
    sim_b = jax.block_until_ready(sim_b)
    assert sim_b.shape == (Bb, Hb, Nb, Nb_)
    ref_b = _reference(lhs_b, rhs_b, num_heads=Hb, exp=1)
    assert jnp.allclose(sim_b.astype(jnp.float32), ref_b, atol=5e-2), \
        "mismatch (bf16, exp=1)"

    # Case 5: non-divisible N / N_ with small forced tiles -> cdiv grid with
    # masked edge tiles (exercises the hardened tile picker).
    Be, Ne, Ne_, He, dime = 1, 40, 200, 2, 64  # d_head = 32
    lhs_e = jax.random.normal(k5, (Be, Ne, dime), dtype=jnp.float32)
    rhs_e = jax.random.normal(k6, (Be, Ne_, dime), dtype=jnp.float32)
    sim_e, _ = headwise_cosine_similarity(lhs_e, rhs_e, num_heads=He, exp=1,
                                          tn=16, tn_=128)
    sim_e = jax.block_until_ready(sim_e)
    ref_e = _reference(lhs_e, rhs_e, num_heads=He, exp=1)
    assert jnp.allclose(sim_e, ref_e, atol=1e-5, rtol=1e-5), \
        "mismatch (edge tiles)"

    print("KERNEL_OK")
</pallas_src>

<mosaic_0001>
module attributes {stable_mosaic.version = 11 : i64} {
  func.func @_cosine_sim_kernel(%arg0: i32, %arg1: i32, %arg2: i32, %arg3: i32, %arg4: memref<1x1x8x8xf32, #tpu.memory_space<vmem>>, %arg5: memref<1x1x8x8xf32, #tpu.memory_space<vmem>>, %arg6: memref<1x1x8x1xf32, #tpu.memory_space<vmem>>, %arg7: memref<1x1x1x8xf32, #tpu.memory_space<vmem>>, %arg8: memref<1x1x8x8xf32, #tpu.memory_space<vmem>>) attributes {dimension_semantics = [#tpu.dimension_semantics<parallel>, #tpu.dimension_semantics<parallel>, #tpu.dimension_semantics<parallel>, #tpu.dimension_semantics<arbitrary>], iteration_bounds = array<i64: 2, 4, 1, 1>, scalar_prefetch = 0 : i64, scratch_operands = 0 : i64, tpu.core_type = #tpu.core_type<tc>, window_params = [{transform_indices = @transform_0, window_bounds = array<i64: 1, 1, 8, 8>}, {transform_indices = @transform_1, window_bounds = array<i64: 1, 1, 8, 8>}, {transform_indices = @transform_2, window_bounds = array<i64: 1, 1, 8, 1>}, {transform_indices = @transform_3, window_bounds = array<i64: 1, 1, 1, 8>}, {transform_indices = @transform_4, window_bounds = array<i64: 1, 1, 8, 8>}]} {
    %c0 = arith.constant 0 : index
    %c0_0 = arith.constant 0 : index
    %c0_1 = arith.constant 0 : index
    %c0_2 = arith.constant 0 : index
    %0 = vector.load %arg4[%c0, %c0_0, %c0_1, %c0_2] : memref<1x1x8x8xf32, #tpu.memory_space<vmem>>, vector<1x1x8x8xf32>
    %1 = vector.shape_cast %0 : vector<1x1x8x8xf32> to vector<8x8xf32>
    %c0_3 = arith.constant 0 : index
    %c0_4 = arith.constant 0 : index
    %c0_5 = arith.constant 0 : index
    %c0_6 = arith.constant 0 : index
    %2 = vector.load %arg5[%c0_3, %c0_4, %c0_5, %c0_6] : memref<1x1x8x8xf32, #tpu.memory_space<vmem>>, vector<1x1x8x8xf32>
    %3 = vector.shape_cast %2 : vector<1x1x8x8xf32> to vector<8x8xf32>
    %cst = arith.constant dense<0.000000e+00> : vector<8x8xf32>
    %4 = tpu.matmul %1, %3, %cst {dimension_numbers = #tpu.dot_dimension_numbers<[1], [1], [0], [0], [0, 0, 1, 0], [], []>} : vector<8x8xf32>, vector<8x8xf32>, vector<8x8xf32> -> vector<8x8xf32>
    %c0_7 = arith.constant 0 : index
    %c0_8 = arith.constant 0 : index
    %c0_9 = arith.constant 0 : index
    %c0_10 = arith.constant 0 : index
    %5 = vector.load %arg6[%c0_7, %c0_8, %c0_9, %c0_10] : memref<1x1x8x1xf32, #tpu.memory_space<vmem>>, vector<1x1x8x1xf32>
    %6 = vector.shape_cast %5 : vector<1x1x8x1xf32> to vector<8x1xf32>
    %7 = vector.broadcast %6 : vector<8x1xf32> to vector<8x8xf32>
    %8 = arith.mulf %4, %7 : vector<8x8xf32>
    %c0_11 = arith.constant 0 : index
    %c0_12 = arith.constant 0 : index
    %c0_13 = arith.constant 0 : index
    %c0_14 = arith.constant 0 : index
    %9 = vector.load %arg7[%c0_11, %c0_12, %c0_13, %c0_14] : memref<1x1x1x8xf32, #tpu.memory_space<vmem>>, vector<1x1x1x8xf32>
    %10 = vector.shape_cast %9 : vector<1x1x1x8xf32> to vector<1x8xf32>
    %11 = vector.broadcast %10 : vector<1x8xf32> to vector<8x8xf32>
    %12 = arith.mulf %8, %11 : vector<8x8xf32>
    %c0_15 = arith.constant 0 : index
    %c0_16 = arith.constant 0 : index
    %c0_17 = arith.constant 0 : index
    %c0_18 = arith.constant 0 : index
    %13 = vector.load %arg8[%c0_15, %c0_16, %c0_17, %c0_18] : memref<1x1x8x8xf32, #tpu.memory_space<vmem>>, vector<1x1x8x8xf32>
    %14 = vector.shape_cast %13 : vector<1x1x8x8xf32> to vector<8x8xf32>
    %15 = vector.shape_cast %12 : vector<8x8xf32> to vector<1x1x8x8xf32>
    tpu.vector_store %arg8[%c0_15, %c0_16, %c0_17, %c0_18], %15 {strides = array<i32>} : memref<1x1x8x8xf32, #tpu.memory_space<vmem>>, vector<1x1x8x8xf32>,
    return
  }
  func.func @transform_0(%arg0: i32, %arg1: i32, %arg2: i32, %arg3: i32) -> (i32, i32, i32, i32) {
    %c0_i32 = arith.constant 0 : i32
    %c0_i32_0 = arith.constant 0 : i32
    return %arg0, %arg1, %arg2, %c0_i32 : i32, i32, i32, i32
  }
  func.func @transform_1(%arg0: i32, %arg1: i32, %arg2: i32, %arg3: i32) -> (i32, i32, i32, i32) {
    %c0_i32 = arith.constant 0 : i32
    %c0_i32_0 = arith.constant 0 : i32
    return %arg0, %arg1, %arg3, %c0_i32 : i32, i32, i32, i32
  }
  func.func @transform_2(%arg0: i32, %arg1: i32, %arg2: i32, %arg3: i32) -> (i32, i32, i32, i32) {
    %c0_i32 = arith.constant 0 : i32
    %c0_i32_0 = arith.constant 0 : i32
    return %arg0, %arg1, %arg2, %c0_i32 : i32, i32, i32, i32
  }
  func.func @transform_3(%arg0: i32, %arg1: i32, %arg2: i32, %arg3: i32) -> (i32, i32, i32, i32) {
    %c0_i32 = arith.constant 0 : i32
    %c0_i32_0 = arith.constant 0 : i32
    return %arg0, %arg1, %c0_i32, %arg3 : i32, i32, i32, i32
  }
  func.func @transform_4(%arg0: i32, %arg1: i32, %arg2: i32, %arg3: i32) -> (i32, i32, i32, i32) {
    %c0_i32 = arith.constant 0 : i32
    return %arg0, %arg1, %arg2, %arg3 : i32, i32, i32, i32
  }
}

</mosaic_0001>

<bundles_post_ra>
// kernel: tpu_custom_call.1
= control target key start
LH: loop header
LB: loop body
LE: loop exit
PB: predicated region body
PF: predicated region fallthrough
CT: control target
= control target key end

     0   :  { %9 = vsyncpa [#allocation3], 0  ;;  %s1086_s0 = inlined_call_operand.vmem [shape: f32[2,4,8,8], index: 0, kind: input, shape index: {}]   ;;  %s1087_s1 = inlined_call_operand.hbm [shape: f32[2,4,8,8], index: 1, kind: input, shape index: {}]   ;;  %s1088_s2 = inlined_call_operand.vmem [shape: f32[2,4,8,1], index: 2, kind: input, shape index: {}]   ;;  %s1089_s3 = inlined_call_operand.vmem [shape: f32[2,4,1,8], index: 3, kind: input, shape index: {}]   ;;  %s1090_s4 = inlined_call_operand.hbm [shape: f32[2,4,8,8], index: 4, kind: output, shape index: {}]  }
   0x1   :  { %11 = vsyncpa [#allocation3 + $0x1], 0 }
   0x2   :  { %12 = vsyncpa [#allocation4], 0 }
   0x3   :  { %14 = vsyncpa [#allocation4 + $0x1], 0  ;;  %s910_s15 = smov 0   ;;  %s912_s16 = smov 0  }
   0x4   :  { %s914_s17 = smov 0   ;;  %s916_s18 = smov 0  }
   0x5   :  { %s918_s19 = smov 0   ;;  %s920_s20 = smov 0  }
   0x6   :  { %s922_s21 = smov 0   ;;  %s924_s22 = smov 0  }
   0x7 LB: > { %s642_s23 = sadd.s32 4294967295, %s878_s22   ;;  %s643_s24 = sadd.s32 4294967294, %s878_s22   ;;  %s878_s22 = sphi %s924_s22, %s20_s22   ;;  %s874_s21 = sphi %s922_s21, %s1109_s21   ;;  %s870_s20 = sphi %s920_s20, %s1108_s20   ;;  %s866_s19 = sphi %s918_s19, %s1107_s19   ;;  %s862_s18 = sphi %s916_s18, %s1106_s18   ;;  %s858_s17 = sphi %s914_s17, %s1105_s17   ;;  %s854_s16 = sphi %s912_s16, %s1104_s16   ;;  %s850_s15 = sphi %s910_s15, %s1103_s15  }
   0x8   : > { %s42_s25 = sadd.s32 1, %s870_s20  ;;  %s46_s26 = sadd.s32 1, %s874_s21 }
   0x9   : > { %p44_p0 = scmp.ge.s32.totalorder %s42_s25, 4  ;;  %s87_s27 = sadd.s32 1, %s858_s17 }
   0xa   : > { %p94_p1 = scmp.ne.s32.totalorder %s858_s17, %s854_s16  ;;  %p95_p2 = scmp.eq.s32.totalorder %s878_s22, 0 }
   0xb   : > { %s1111_s25 = smov (%p44_p0, %s42_s25), 0  ;;  %s1113_s26 = smov (!%p44_p0, %s46_s26), %s874_s21 }
   0xc   : > { %1093 = sst [smem:[#allocation8_spill]] %s1111_s25  ;;  %s81_s28 = ssub.s32 %s870_s20, %s1111_s25 }
   0xd   : > { %p963_p3 = por %p95_p2, %p94_p1  ;;  %p48_p4 = scmp.ge.s32.totalorder %s1113_s26, 2 }
   0xe   : > { %p100_p5 = scmp.ne.s32.totalorder %s854_s16, %s850_s15  ;;  %p101_p6 = scmp.eq.s32.totalorder %s642_s23, 0 }
   0xf   : > { %p190_p7 = scmp.eq.s32.totalorder %s642_s23, 7  ;;  %s1115_s26 = smov (%p48_p4, %s1113_s26), 0 }
  0x10   : > { %1095 = sst [smem:[#allocation9_spill]] %s1115_s26  ;;  %p971_p8 = por %p101_p6, %p100_p5 }
  0x11   : > { %p975_p9 = por %p190_p7, %p94_p1  ;;  %s80_s6 = ssub.s32 %s874_s21, %s1115_s26 }
  0x12   : > { %p196_p10 = scmp.eq.s32.totalorder %s643_s24, 7  ;;  %s82_s7 = sor.u32 %s81_s28, %s80_s6 }
  0x13   : > { %p85_p11 = scmp.eq.s32.totalorder %s82_s7, 0  ;;  %p684_p13 = scmp.lt.s32.totalorder %s878_s22, 8 }
  0x14   : > { %p981_p12 = por %p196_p10, %p100_p5  ;;  %s230_s9 = sand.u32 1, %s858_s17  }
  0x15   : > { %s988_s10 = scalar_select %p85_p11, %s858_s17, %s87_s27  }
  0x16   : > { %s1098_s8 = scalar_select %p981_p12, 1, 0 }
  0x17   : > { %s646_s11 = sshll.u32 %s230_s9, 3  ;;  %s647_s12 = sshll.u32 %s874_s21, 2 }
  0x18   : > { %s240_s13 = sadd.s32 %s870_s20, %s647_s12  ;;  %s234_s14 = scalar_lea.vmem [#allocation2], %s646_s11 }
  0x19   : > { %s244_s23 = sshll.u32 %s234_s14, 4  ;;  %s648_s26 = sshll.u32 %s240_s13, 7  ;;  %s245_s23 = int_to_ptr.vmem [resolvable:$true] %s244_s23 }
  0x1a   : > { %s242_s28 = scalar_lea.hbm %s1087_s1, %s648_s26  ;;  %p997_p0 = pnand %p684_p13, %p963_p3 }
  0x1b   : > { %p649_p1 = scmp.ge.s32.totalorder %s878_s22, 1  ;;  %p276_p2 = scmp.lt.s32.totalorder %s878_s22, 9 }
  0x1c   : > { %s231_s27 = scalar_lea.sflag [#allocation3], %s230_s9  ;;  %p756_p4 = pneg %p997_p0 }
  0x1d   : > { %s767_s7 = scalar_lea.vmem %s245_s23, 128  ;;  %s880_s11 = smov [#allocation2]  }
  0x1e   : > { %p768_p5 = scmp.ne.s32.totalorder %s245_s23, %s767_s7  ;;  %s772_s12 = sshll.u32 %s880_s11, 4  ;;  %s773_s12 = int_to_ptr.vmem [resolvable:$false] %s772_s12 }
  0x1f   : > { %s774_s25 = scalar_lea.vmem %s773_s12, 256  ;;  %p775_p10 = scmp.lt.s32.totalorder %s245_s23, %s773_s12 }
  0x20   : > { %p770_p6 = pnand %p768_p5, %p756_p4  ;;  %p776_p11 = scmp.lt.s32.totalorder %s774_s25, %s767_s7 }
  0x22   : > { %p771_p7 = pneg %p770_p6  ;;  %p777_p3 = por %p776_p11, %p775_p10 }
  0x24   : > { %p778_p13 = pnand %p777_p3, %p771_p7 }
  0x26   : > { %781 = shalt.err (!%p778_p13)
}
  0x27   : > { %679 = dma.hbm_to_vmem [thread:$0]  (!%p997_p0), %s242_s28, 128, %s245_s23, %s231_s27  }
  0x28   : > { %p277_p12 = pnand %p649_p1, %p276_p2 }
  0x29   : > { %s1012_s26 = sand.u32 (!%p277_p12), 1, %s854_s16  }
  0x2a   : > { %280 = sbr.rel (%p277_p12) target bundleno = 267 (0x10b), region = 36  ;;  %s650_s29 = sshll.u32 (!%p277_p12), %s1012_s26, 3 }
  0x2b   : > { %s283_s9 = scalar_lea.sflag (!%p277_p12), [#allocation3], %s1012_s26  ;;  %s286_s13 = scalar_lea.vmem (!%p277_p12), [#allocation2], %s650_s29 }
  0x2f   : > { %841 = dma.done.wait (%p971_p8), %s283_s9, 128  }
  0x30   : > { %843 = vsyncadd (%p971_p8), %s283_s9, 4294967168  ;;  %p343_p12 = scmp.lt.s32.totalorder %s866_s19, 1  ;;  %p345_p0 = scmp.lt.s32.totalorder %s862_s18, 3  ;;  %v881_v0 = vmov 0.0   ;;  %vm882_vm0 = vmmov 0   ;;  %v883_v1 = vmov 0  }
  0x31   : > { %667 = vmatprep.subr.mxu0 %v881_v0  ;;  %669 = vmatprep.mubr.msk.f32.mxu0 %vm882_vm0, %v881_v0  ;;  %vm377_vm1 = vcmask 64512   ;;  %v376_v2 = vld [vmem:[%s286_s13] sm:$0xff]  ;;  %s661_s9 = sshll.u32 %s866_s19, 2  ;;  %s884_s12 = smov [#allocation5]  }
  0x32   : > { %s344_s14 = scalar_select %p343_p12, %s866_s19, 1  ;;  %753 = vset.pattern.permute.xlu0 %v883_v1  ;;  %668 = vmatpush3.xpose.msk.msra.mxu0 %vm377_vm1, %v376_v2 }
  0x33   : > { %s346_s23 = scalar_select %p345_p0, %s862_s18, 3 }
  0x34   : > { %s652_s24 = sshll.u32 %s344_s14, 2 }
  0x35   : > { %s351_s30 = sadd.s32 %s652_s24, %s346_s23  ;;  %s484_s24 = sadd.s32 %s862_s18, %s661_s9 }
  0x36   : > { %s653_s28 = sshll.u32 %s351_s30, 3  ;;  %s374_s13 = scalar_lea.vmem %s1089_s3, %s351_s30 }
  0x37   : > { %s353_s7 = scalar_lea.vmem %s1086_s0, %s653_s28  ;;  %s364_s25 = scalar_lea.vmem %s1088_s2, %s653_s28  ;;  %v659_v7 = vld [vmem:[%s374_s13] ss:$0 sm:$0xff] }
  0x38   : > { %v375_v3 = vld [vmem:[%s353_s7] sm:$0xff]  ;;  %s662_s6 = sshll.u32 %s484_s24, 7  ;;  %s342_s28 = scalar_lea.vmem [#allocation5], %s650_s29 }
  0x39   : > { %v454_v4 = vld [vmem:[%s364_s25] sm:$0xff]  ;;  %670 = vmatmul.mubr.msk.f32.vlgmr.msra.gmra.mxu0 %vm377_vm1, %v375_v3  ;;  %s488_s27 = sshll.u32 %s342_s28, 4  ;;  %s486_s19 = scalar_lea.hbm %s1090_s4, %s662_s6  ;;  %s489_s27 = int_to_ptr.vmem [resolvable:$true] %s488_s27 }
  0x3a   : > { %457 = vperm.xlu0 %753, %v454_v4   ;;  %s471_s30 = scalar_lea.sflag [#allocation4], %s1012_s26  ;;  %s782_s18 = scalar_lea.vmem %s489_s27, 128 }
  0x3b   : > { %p783_p8 = scmp.ne.s32.totalorder %s489_s27, %s782_s18  ;;  %s786_s25 = sshll.u32 %s884_s12, 4  ;;  %s787_s25 = int_to_ptr.vmem [resolvable:$false] %s786_s25 }
  0x3c   : > { %s788_s29 = scalar_lea.vmem %s787_s25, 256  ;;  %p789_p4 = scmp.lt.s32.totalorder %s489_s27, %s787_s25 }
  0x3d   : > { %p784_p1 = pnand %p783_p8, %p975_p9  ;;  %p790_p5 = scmp.lt.s32.totalorder %s788_s29, %s782_s18 }
  0x3f   : > { %p785_p2 = pneg %p784_p1  ;;  %p791_p6 = por %p790_p5, %p789_p4 }
  0x41   : > { %p792_p7 = pnand %p791_p6, %p785_p2 }
  0xb5   : > { %v458_v5 = vpop.permute.xlu0 %457 }
  0xf9   : > { %v450_v6 = vpop.f32.mrf.mxu0 }
  0xfa   : > { %v460_v8 = vmul.f32 %v458_v5, %v450_v6 }
  0xfb   : > { %v671_v9 = vpop.f32.mrf.mxu0 }
  0xfc   : > { %v468_v10 = vmul.f32 %v659_v7, %v460_v8 }
  0xfe   : > { %469 = vst.msk [vmem:[%s342_s28] sm:$0xff] %vm377_vm1, %v468_v10 }
  0xff   : > { %795 = shalt.err (!%p792_p7)
}
 0x100   : > { %s796_s9 = scalar_lea.hbm %s486_s19, 128  ;;  %s800_s23 = scalar_lea.hbm %s1090_s4, 1024 }
 0x101   : > { %p797_p10 = scmp.ne.s32.totalorder %s486_s19, %s796_s9  ;;  %p801_p13 = scmp.lt.s32.totalorder %s486_s19, %s1090_s4 }
 0x102   : > { %p802_p12 = scmp.lt.s32.totalorder %s800_s23, %s796_s9 }
 0x103   : > { %p798_p11 = pnand %p797_p10, %p975_p9 }
 0x104   : > { %p803_p0 = por %p802_p12, %p801_p13 }
 0x105   : > { %p799_p3 = pneg %p798_p11 }
 0x107   : > { %p804_p8 = pnand %p803_p0, %p799_p3 }
 0x109   : > { %807 = shalt.err (!%p804_p8)
}
 0x10a   : > { %674 = dma.vmem_to_hbm [thread:$0]  (%p975_p9), %s489_s27, 128, %s486_s19, %s471_s30  }
 0x10b PF: > { %p685_p1 = scmp.ge.s32.totalorder %s878_s22, 2  ;;  %s500_s6 = sand.u32 1, %s850_s15  }
 0x10c   : > { %p1100_p2 = scmp.ne.s32.totalorder %s1098_s8, 0  ;;  %s501_s28 = scalar_lea.sflag [#allocation4], %s500_s6 }
 0x10e   : > { %p681_p4 = pnand %p685_p1, %p1100_p2 }
 0x110   : > { %p682_p5 = pneg %p681_p4 }
 0x112   : > { %845 = dma.done.wait (%p682_p5), %s501_s28, 128  }
 0x113   : > { %847 = vsyncadd (%p682_p5), %s501_s28, 4294967168  ;;  %s20_s22 = sadd.s32 1, %s878_s22   ;;  %s1101_s5 = sld [smem:[#allocation8_spill]] }
 0x114   : > { %p17_p6 = scmp.ge.s32.totalorder %s20_s22, 10   ;;  %s1102_s27 = sld [smem:[#allocation9_spill]] }
 0x115   : > { %s1103_s15 = smov %s854_s16  ;;  %s1104_s16 = smov %s858_s17 }
 0x116   : > { %s1105_s17 = smov %s988_s10  ;;  %s1106_s18 = smov %s870_s20 }
 0x117   : > { %s1107_s19 = smov %s874_s21  ;;  %19 = sbr.rel (!%p17_p6) target bundleno = 7 (0x7), region = 90 }
 0x119   : > { %s1108_s20 = smov %s1101_s5 }
 0x11a   : > { %s1109_s21 = smov %s1102_s27 }
 0x11c   :  { %506 = vsyncpa [#allocation3], 1 }
 0x11d   :  { %508 = vsyncpa [#allocation3 + $0x1], 1 }
 0x11e   :  { %509 = vsyncpa [#allocation4], 1 }
 0x11f   :  { %511 = vsyncpa [#allocation4 + $0x1], 1 }

</bundles_post_ra>
